<compile_context>
chip_gen: v7x
topology: tpu7x:2x2x1
jax: 0.10.0
libtpu: 0.0.40
codegen_flags: <defaults>
</compile_context>

<pallas_src>
import math

import jax
import jax.numpy as jnp
from jax.experimental import pallas as pl
from jax.experimental.pallas import tpu as pltpu


def _round_up(x: int, m: int) -> int:
    return ((x + m - 1) // m) * m


def _inverse_softplus(y: float) -> float:
    # softplus^{-1}(y) = log(expm1(y)); stable for both small and large y.
    if y > 20.0:
        return y + math.log1p(-math.exp(-y))
    return math.log(math.expm1(y))


def _stable_softplus(x):
    # softplus(x) = max(x, 0) + log1p(exp(-|x|))  (numerically stable, VPU/EUP only)
    return jnp.maximum(x, 0.0) + jnp.log1p(jnp.exp(-jnp.abs(x)))


def _make_kernel(shift: float, min_var: float, dist_dim: int):
    def kernel(x_ref, w_ref, b_ref, out_ref):
        # x: (TB, F), w: (F, 2D) in compute dtype (bf16 by default); acc in f32.
        pre = (
            jnp.dot(x_ref[...], w_ref[...], preferred_element_type=jnp.float32)
            + b_ref[...]
        )  # (TB, 2D) f32

        # Lanes [0, D) are the mean head; lanes [D, 2D) are the std head.
        lane = jax.lax.broadcasted_iota(jnp.int32, pre.shape, dimension=1)
        std_branch = _stable_softplus(pre + shift) + min_var  # f32 epilogue
        out = jnp.where(lane >= dist_dim, std_branch, pre)
        out_ref[...] = out.astype(out_ref.dtype)

    return kernel


def diag_gaussian_parameter_layer(
    features: jax.Array,        # (B, in_features)
    w_mean: jax.Array,          # (in_features, distribution_dim)
    b_mean: jax.Array,          # (distribution_dim,)
    w_std: jax.Array,           # (in_features, distribution_dim)
    b_std: jax.Array,           # (distribution_dim,)
    *,
    init_var: float = 1.0,
    min_var: float = 1e-6,
    compute_dtype=jnp.bfloat16,  # matmul-input dtype (f32 accumulation regardless)
    block_batch: int = 512,
):
    B, F = features.shape
    D = w_mean.shape[1]
    shift = _inverse_softplus(init_var - min_var)

    # Fuse the two heads: one (F, 2D) weight and one (1, 2D) bias.
    w_cat = jnp.concatenate([w_mean, w_std], axis=1).astype(compute_dtype)   # (F, 2D)
    b_cat = jnp.concatenate([b_mean, b_std], axis=0).reshape(1, 2 * D)       # (1, 2D) f32
    b_cat = b_cat.astype(jnp.float32)

    # Batch tiling: tile rows (padded to a multiple of 8 / the tile size).
    tb = min(block_batch, _round_up(B, 8))
    b_pad = _round_up(B, tb)
    x = features.astype(compute_dtype)
    if b_pad != B:
        x = jnp.pad(x, ((0, b_pad - B), (0, 0)))

    grid = (b_pad // tb,)
    n2d = 2 * D

    cost = pl.CostEstimate(
        flops=2 * b_pad * F * n2d,
        transcendentals=2 * b_pad * D,  # exp + log1p on the std half
        bytes_accessed=(
            x.size * x.dtype.itemsize
            + w_cat.size * w_cat.dtype.itemsize
            + b_cat.size * 4
            + b_pad * n2d * 4
        ),
    )

    out = pl.pallas_call(
        _make_kernel(shift, min_var, D),
        out_shape=jax.ShapeDtypeStruct((b_pad, n2d), jnp.float32),
        grid_spec=pltpu.PrefetchScalarGridSpec(
            num_scalar_prefetch=0,
            grid=grid,
            in_specs=[
                pl.BlockSpec((tb, F), lambda i: (i, 0)),   # x tile (pipelined)
                pl.BlockSpec((F, n2d), lambda i: (0, 0)),  # fused weights (resident)
                pl.BlockSpec((1, n2d), lambda i: (0, 0)),  # fused bias (resident)
            ],
            out_specs=pl.BlockSpec((tb, n2d), lambda i: (i, 0)),
        ),
        compiler_params=pltpu.CompilerParams(
            dimension_semantics=("parallel",),
        ),
        cost_estimate=cost,
    )(x, w_cat, b_cat)

    mean = out[:B, :D]
    std = out[:B, D:]
    return mean, std


def _init_linear_params(key, in_features, out_features):
    # Deterministic init matching torch.nn.Linear's default bounds.
    k_w, k_b = jax.random.split(key)
    bound = 1.0 / math.sqrt(in_features)
    # stored transposed: (in_features, out_features)
    w = jax.random.uniform(k_w, (in_features, out_features), jnp.float32, -bound, bound)
    b = jax.random.uniform(k_b, (out_features,), jnp.float32, -bound, bound)
    return w, b


if __name__ == "__main__":
    in_features = 32
    distribution_dim = 16
    batch = 8

    key = jax.random.PRNGKey(0)
    k_x, k_m, k_s = jax.random.split(key, 3)

    x = jax.random.normal(k_x, (batch, in_features), jnp.float32)
    w_mean, b_mean = _init_linear_params(k_m, in_features, distribution_dim)
    w_std, b_std = _init_linear_params(k_s, in_features, distribution_dim)

    init_var, min_var = 1.0, 1e-6
    shift = _inverse_softplus(init_var - min_var)
    ref_mean = x @ w_mean + b_mean
    ref_std = jax.nn.softplus(x @ w_std + b_std + shift) + min_var

    # 1) f32 compute path: tight check against the reference.
    mean32, std32 = diag_gaussian_parameter_layer(
        x, w_mean, b_mean, w_std, b_std,
        init_var=init_var, min_var=min_var, compute_dtype=jnp.float32,
    )
    jax.block_until_ready((mean32, std32))
    assert jnp.allclose(mean32, ref_mean, atol=1e-5, rtol=1e-5)
    assert jnp.allclose(std32, ref_std, atol=1e-5, rtol=1e-5)

    # 2) default bf16 matmul path (v6e/v7x fast path): loose check.
    mean_bf, std_bf = diag_gaussian_parameter_layer(
        x, w_mean, b_mean, w_std, b_std, init_var=init_var, min_var=min_var,
    )
    jax.block_until_ready((mean_bf, std_bf))
    assert jnp.allclose(mean_bf, ref_mean, atol=2e-2, rtol=2e-2)
    assert jnp.allclose(std_bf, ref_std, atol=2e-2, rtol=2e-2)

    print("KERNEL_OK")
</pallas_src>

<mosaic_0001>
module attributes {stable_mosaic.version = 11 : i64} {
  func.func @kernel(%arg0: i32, %arg1: memref<8x32xf32, #tpu.memory_space<vmem>>, %arg2: memref<32x32xf32, #tpu.memory_space<vmem>>, %arg3: memref<1x32xf32, #tpu.memory_space<vmem>>, %arg4: memref<8x32xf32, #tpu.memory_space<vmem>>) attributes {dimension_semantics = [#tpu.dimension_semantics<parallel>], iteration_bounds = array<i64: 1>, scalar_prefetch = 0 : i64, scratch_operands = 0 : i64, tpu.core_type = #tpu.core_type<tc>, window_params = [{transform_indices = @transform_0, window_bounds = array<i64: 8, 32>}, {pipeline_mode = #tpu.pipeline_mode<synchronous>, transform_indices = @transform_1, window_bounds = array<i64: 32, 32>}, {pipeline_mode = #tpu.pipeline_mode<synchronous>, transform_indices = @transform_2, window_bounds = array<i64: 1, 32>}, {transform_indices = @transform_3, window_bounds = array<i64: 8, 32>}]} {
    %c0 = arith.constant 0 : index
    %c0_0 = arith.constant 0 : index
    %0 = vector.load %arg1[%c0, %c0_0] : memref<8x32xf32, #tpu.memory_space<vmem>>, vector<8x32xf32>
    %c0_1 = arith.constant 0 : index
    %c0_2 = arith.constant 0 : index
    %1 = vector.load %arg2[%c0_1, %c0_2] : memref<32x32xf32, #tpu.memory_space<vmem>>, vector<32x32xf32>
    %cst = arith.constant dense<0.000000e+00> : vector<8x32xf32>
    %2 = tpu.matmul %0, %1, %cst {dimension_numbers = #tpu.dot_dimension_numbers<[1], [0], [0], [1], [0, 0, 1, 1], [], []>} : vector<8x32xf32>, vector<32x32xf32>, vector<8x32xf32> -> vector<8x32xf32>
    %c0_3 = arith.constant 0 : index
    %c0_4 = arith.constant 0 : index
    %3 = vector.load %arg3[%c0_3, %c0_4] : memref<1x32xf32, #tpu.memory_space<vmem>>, vector<1x32xf32>
    %4 = vector.broadcast %3 : vector<1x32xf32> to vector<8x32xf32>
    %5 = arith.addf %2, %4 : vector<8x32xf32>
    %6 = tpu.iota {dimensions = array<i32: 1>} : vector<8x32xi32>
    %cst_5 = arith.constant 0.541323245 : f32
    %7 = vector.broadcast %cst_5 : f32 to vector<8x32xf32>
    %8 = arith.addf %5, %7 : vector<8x32xf32>
    %cst_6 = arith.constant 0.000000e+00 : f32
    %9 = vector.broadcast %cst_6 : f32 to vector<8x32xf32>
    %10 = arith.maximumf %8, %9 : vector<8x32xf32>
    %11 = math.absf %8 : vector<8x32xf32>
    %cst_7 = arith.constant 0.000000e+00 : f32
    %12 = vector.broadcast %cst_7 : f32 to vector<8x32xf32>
    %13 = arith.subf %12, %11 : vector<8x32xf32>
    %14 = math.exp %13 : vector<8x32xf32>
    %15 = math.log1p %14 : vector<8x32xf32>
    %16 = arith.addf %10, %15 : vector<8x32xf32>
    %cst_8 = arith.constant 9.99999997E-7 : f32
    %17 = vector.broadcast %cst_8 : f32 to vector<8x32xf32>
    %18 = arith.addf %16, %17 : vector<8x32xf32>
    %c16_i32 = arith.constant 16 : i32
    %19 = vector.broadcast %c16_i32 : i32 to vector<8x32xi32>
    %20 = arith.cmpi sge, %6, %19 : vector<8x32xi32>
    %21 = arith.select %20, %18, %5 : vector<8x32xi1>, vector<8x32xf32>
    %c0_9 = arith.constant 0 : index
    %c0_10 = arith.constant 0 : index
    %22 = vector.load %arg4[%c0_9, %c0_10] : memref<8x32xf32, #tpu.memory_space<vmem>>, vector<8x32xf32>
    tpu.vector_store %arg4[%c0_9, %c0_10], %21 {strides = array<i32>} : memref<8x32xf32, #tpu.memory_space<vmem>>, vector<8x32xf32>,
    return
  }
  func.func @transform_0(%arg0: i32) -> (i32, i32) {
    %c0_i32 = arith.constant 0 : i32
    %c0_i32_0 = arith.constant 0 : i32
    return %arg0, %c0_i32 : i32, i32
  }
  func.func @transform_1(%arg0: i32) -> (i32, i32) {
    %c0_i32 = arith.constant 0 : i32
    %c0_i32_0 = arith.constant 0 : i32
    %c0_i32_1 = arith.constant 0 : i32
    return %c0_i32, %c0_i32_0 : i32, i32
  }
  func.func @transform_2(%arg0: i32) -> (i32, i32) {
    %c0_i32 = arith.constant 0 : i32
    %c0_i32_0 = arith.constant 0 : i32
    %c0_i32_1 = arith.constant 0 : i32
    return %c0_i32, %c0_i32_0 : i32, i32
  }
  func.func @transform_3(%arg0: i32) -> (i32, i32) {
    %c0_i32 = arith.constant 0 : i32
    %c0_i32_0 = arith.constant 0 : i32
    return %arg0, %c0_i32 : i32, i32
  }
}

</mosaic_0001>

<bundles_post_ra>
// kernel: tpu_custom_call.1
= control target key start
LH: loop header
LB: loop body
LE: loop exit
PB: predicated region body
PF: predicated region fallthrough
CT: control target
= control target key end

     0   :  { %8 = vsyncpa [#allocation3], 0  ;;  %s349_s0 = inlined_call_operand.hbm [shape: f32[8,32], index: 0, kind: input, shape index: {}]   ;;  %s350_s1 = inlined_call_operand.hbm [shape: f32[32,32], index: 1, kind: input, shape index: {}]   ;;  %s351_s2 = inlined_call_operand.vmem [shape: f32[1,32], index: 2, kind: input, shape index: {}]   ;;  %s352_s3 = inlined_call_operand.hbm [shape: f32[8,32], index: 3, kind: output, shape index: {}]  }
   0x1   :  { %9 = vsyncpa [#allocation6], 0 }
   0x2   :  { %10 = vsyncpa [#allocation4], 0  ;;  %s273_s12 = smov [#allocation2]   ;;  %s274_s14 = smov [#allocation5]  }
   0x3   :  { %s17_s13 = sshll.u32 %s273_s12, 4  ;;  %s26_s15 = sshll.u32 %s274_s14, 4  ;;  %s18_s13 = int_to_ptr.vmem [resolvable:$true] %s17_s13  ;;  %s301_s15 = int_to_ptr.vmem [resolvable:$true] %s26_s15 }
   0x4   :  { %s201_s18 = scalar_lea.hbm %s349_s0, 128 }
   0x5   :  { %p202_p0 = scmp.ne.s32.totalorder %s349_s0, %s201_s18  ;;  %p205_p1 = scmp.lt.u32.totalorder %s201_s18, %s349_s0 }
   0x7   :  { %p207_p2 = pnand %p205_p1, %p202_p0 }
   0x9   :  { %210 = shalt.err (!%p207_p2)
}
   0xa   :  { %s211_s23 = scalar_lea.vmem %s18_s13, 128  ;;  %p216_p4 = scmp.lt.s32.totalorder %s18_s13, %s18_s13 }
   0xb   :  { %p212_p3 = scmp.ne.s32.totalorder %s18_s13, %s211_s23  ;;  %p217_p5 = scmp.lt.s32.totalorder %s211_s23, %s211_s23 }
   0xd   :  { %p218_p6 = por %p217_p5, %p216_p4 }
   0xf   :  { %p219_p7 = pnand %p218_p6, %p212_p3 }
  0x11   :  { %222 = shalt.err (!%p219_p7)
}
  0x12   :  { %20 = dma.hbm_to_vmem [thread:$0]  %s349_s0, 128, %s18_s13, [#allocation3]  }
  0x13   :  { %s223_s28 = scalar_lea.hbm %s350_s1, 512 }
  0x14   :  { %p224_p8 = scmp.ne.s32.totalorder %s350_s1, %s223_s28  ;;  %p227_p9 = scmp.lt.u32.totalorder %s223_s28, %s350_s1 }
  0x16   :  { %p229_p10 = pnand %p227_p9, %p224_p8 }
  0x18   :  { %232 = shalt.err (!%p229_p10)
}
  0x19   :  { %s233_s6 = scalar_lea.vmem %s301_s15, 512  ;;  %p238_p12 = scmp.lt.s32.totalorder %s301_s15, %s301_s15 }
  0x1a   :  { %p234_p11 = scmp.ne.s32.totalorder %s301_s15, %s233_s6  ;;  %p239_p13 = scmp.lt.s32.totalorder %s233_s6, %s233_s6 }
  0x1c   :  { %p240_p0 = por %p239_p13, %p238_p12 }
  0x1e   :  { %p241_p1 = pnand %p240_p0, %p234_p11 }
  0x20   :  { %244 = shalt.err (!%p241_p1)
}
  0x21   :  { %s275_s0 = smov 128   ;;  %s276_s7 = smov 8  }
  0x22   :  { %32 = dma.hbm_to_vmem [thread:$0]  %s350_s1, 512, %s301_s15, [#allocation6], %s275_s0, %s275_s0, %s276_s7  }
  0x23   :  { %267 = dma.done.wait [#allocation3], 128  }
  0x24   :  { %268 = vsyncadd [#allocation3], 4294967168 }
  0x25   :  { %269 = dma.done.wait [#allocation6], 512  }
  0x26   :  { %270 = vsyncadd [#allocation6], 4294966784  ;;  %v277_v0 = vmov 0.0|0.0   ;;  %vm278_vm0 = vmmov 0   ;;  %v279_v1 = vmov 0.0   ;;  %v42_v2 = vld [vmem:[#allocation5] sm:$0xff]  ;;  %v127_v21 = vlaneseq }
  0x27   :  { %183 = vmatprep.subr.bf16.mxu0 %v277_v0  ;;  %180 = vmatprep.mubr.msk.f32.mxu0 %vm278_vm0, %v279_v1  ;;  %v43_v3 = vld [vmem:[#allocation5 + $0x8] sm:$0xff]  ;;  %v44_v4 = vld [vmem:[#allocation5 + $0x10] sm:$0xff]  ;;  %v45_v6 = vld [vmem:[#allocation5 + $0x18] sm:$0xff]  ;;  %vm53_vm1 = vcmask 261120  }
  0x28   :  { %v184_v5 = vpack.c.bf16 %v43_v3, %v42_v2  ;;  %v187_v7 = vpack.c.bf16 %v45_v6, %v44_v4  ;;  %v41_v8 = vld [vmem:[#allocation2] sm:$0xff]  ;;  %v128_v26 = vand.u32 127, %v127_v21 }
  0x29   :  { %v165_v9 = vld [vmem:[%s351_s2] ss:$0 sm:$0xff]  ;;  %s280_s2 = smov [#allocation7]  }
  0x2a   :  { %185 = vmatpush3.bf16.msra.mxu0 %v184_v5  ;;  %s155_s11 = sshll.u32 %s280_s2, 4  ;;  %vm146_vm3 = vcmp.ge.s32.totalorder %v128_v26, 16  ;;  %s156_s11 = int_to_ptr.vmem [resolvable:$true] %s155_s11 }
  0x2b   :  { %186 = vmatprep.subr.bf16.mxu0 %v277_v0  ;;  %s245_s12 = scalar_lea.vmem %s156_s11, 128  ;;  %p250_p3 = scmp.lt.s32.totalorder %s156_s11, %s156_s11 }
  0x2c   :  { %p246_p2 = scmp.ne.s32.totalorder %s156_s11, %s245_s12  ;;  %p251_p4 = scmp.lt.s32.totalorder %s245_s12, %s245_s12 }
  0x2e   :  { %188 = vmatpush3.bf16.msra.mxu0 %v187_v7  ;;  %p252_p5 = por %p251_p4, %p250_p3 }
  0x30   :  { %p253_p6 = pnand %p252_p5, %p246_p2 }
  0x31   :  { %181 = vmatmul.mubr.msk.f32.vlgmr.msra.gmra.mrb[0].mxu0 %vm53_vm1, %v41_v8 }
 0x104   :  { %v123_v10 = vpop.f32.mrb[0].mxu0 }
 0x105   :  { %v124_v11 = vadd.f32 %v165_v9, %v123_v10  ;;  %v182_v12 = vpop.f32.mrb[1].mxu0 }
 0x107   :  { %v129_v13 = vadd.f32 0.54132324, %v124_v11 }
 0x109   :  { %v131_v14 = vand.u32 2147483647, %v129_v13  ;;  %v130_v27 = vmax.f32 %v129_v13, 0.0 }
 0x10b   :  { %v132_v15 = vsub.f32 0.0, %v131_v14 }
 0x10d   :  { %v133_v16 = vmul.f32 1.442695, %v132_v15 }
 0x10f   :  { %197 = vpow2.f32 %v133_v16 }
 0x119   :  { %v198_v17 = vpop.eup %197 }
 0x11a   :  { %v135_v18 = vadd.f32 1.0, %v198_v17  ;;  %v138_v19 = vmul.f32 -0.5, %v198_v17  ;;  %v141_v22 = vand.u32 2147483647, %v198_v17 }
 0x11c   :  { %199 = vlog2.f32 %v135_v18  ;;  %v139_v20 = vadd.f32 1.0, %v138_v19  ;;  %vm142_vm2 = vcmp.lt.f32.partialorder %v141_v22, 0.0004427343 }
 0x11e   :  { %v140_v25 = vmul.f32 %v198_v17, %v139_v20 }
 0x126   :  { %v200_v23 = vpop.eup %199 }
 0x127   :  { %v137_v24 = vmul.f32 0.6931472, %v200_v23 }
 0x129   :  { %v143_v28 = vsel %vm142_vm2, %v140_v25, %v137_v24 }
 0x12a   :  { %v144_v29 = vadd.f32 %v143_v28, %v130_v27 }
 0x12c   :  { %v145_v30 = vadd.f32 1e-06, %v144_v29 }
 0x12e   :  { %v147_v31 = vsel %vm146_vm3, %v145_v30, %v124_v11 }
 0x12f   :  { %148 = vst.msk [vmem:[#allocation7] sm:$0xff] %vm53_vm1, %v147_v31 }
 0x130   :  { %256 = shalt.err (!%p253_p6)
}
 0x131   :  { %s257_s15 = scalar_lea.hbm %s352_s3, 128 }
 0x132   :  { %p258_p7 = scmp.ne.s32.totalorder %s352_s3, %s257_s15  ;;  %p261_p8 = scmp.lt.u32.totalorder %s257_s15, %s352_s3 }
 0x134   :  { %p263_p9 = pnand %p261_p8, %p258_p7 }
 0x136   :  { %266 = shalt.err (!%p263_p9)
}
 0x137   :  { %158 = dma.vmem_to_hbm [thread:$0]  %s156_s11, 128, %s352_s3, [#allocation4]  }
 0x138   :  { %271 = dma.done.wait [#allocation4], 128  }
 0x139   :  { %272 = vsyncadd [#allocation4], 4294967168 }
 0x13a   :  { %162 = vsyncpa [#allocation3], 1 }
 0x13b   :  { %163 = vsyncpa [#allocation6], 1 }
 0x13c   :  { %164 = vsyncpa [#allocation4], 1 }

</bundles_post_ra>
